<compile_context>
chip_gen: v7x
topology: tpu7x:2x2x1
jax: 0.10.0
libtpu: 0.0.40
codegen_flags: <defaults>
</compile_context>

<pallas_src>
import jax
import jax.numpy as jnp
from jax.experimental import pallas as pl
from jax.experimental.pallas import tpu as pltpu

SUBLANE = 8  # f32 sublane width: pad batch to a multiple of this


# ----------------------------------------------------------------------------
# Kernels
# ----------------------------------------------------------------------------
def _bidir_recurrence(x_ref, wf_ref, wb_ref, uf_ref, ub_ref, bf_ref, bb_ref,
                      out_seq_ref=None):
    """Shared fused bidirectional tanh-RNN recurrence over the full sequence.

    x_ref  : (P, S, B, Fp)  input split into P feature parts (P=1 for the raw
             input, P=2 for a previous bidirectional layer's output)
    wf/wb  : (P, Fp, H)     W_ih^T per direction, split to match the P parts
    uf/ub  : (H, H)         W_hh^T per direction
    bf/bb  : (1, H)         b_ih + b_hh per direction
    out_seq_ref : optional (2, S, B, H) per-timestep hidden states
                  ([0] = forward at time t, [1] = backward realigned to time t)
    Returns (hf, hb): final hidden states == PyTorch hidden[-2], hidden[-1].
    """
    P, S, B, Fp = x_ref.shape
    H = uf_ref.shape[0]

    # Hoisted input projection (no recurrence): one big (S*B, Fp) @ (Fp, H)
    # MXU matmul per part and direction, bias folded in.
    xpf = bf_ref[...]
    xpb = bb_ref[...]
    for p in range(P):
        x_flat = x_ref[p].reshape(S * B, Fp)
        xpf = xpf + jnp.dot(x_flat, wf_ref[p], preferred_element_type=jnp.float32)
        xpb = xpb + jnp.dot(x_flat, wb_ref[p], preferred_element_type=jnp.float32)

    whh_f = uf_ref[...]
    whh_b = ub_ref[...]
    hf = jnp.zeros((B, H), jnp.float32)
    hb = jnp.zeros((B, H), jnp.float32)

    # Statically unrolled recurrences (S is small & static); the two directions
    # are independent serial chains that the scheduler interleaves.
    for t in range(S):
        tb = S - 1 - t
        hf = jnp.tanh(xpf[t * B:(t + 1) * B, :]
                      + jnp.dot(hf, whh_f, preferred_element_type=jnp.float32))
        hb = jnp.tanh(xpb[tb * B:(tb + 1) * B, :]
                      + jnp.dot(hb, whh_b, preferred_element_type=jnp.float32))
        if out_seq_ref is not None:
            out_seq_ref[0, t] = hf    # forward state at time t
            out_seq_ref[1, tb] = hb   # backward state realigned to time tb
    return hf, hb


def _bidir_layer_kernel(x_ref, wf_ref, wb_ref, uf_ref, ub_ref, bf_ref, bb_ref,
                        out_ref):
    """Non-last bidirectional layer: emits full (2, S, B, H) hidden sequence."""
    _bidir_recurrence(x_ref, wf_ref, wb_ref, uf_ref, ub_ref, bf_ref, bb_ref,
                      out_seq_ref=out_ref)


def _bidir_last_layer_fc_kernel(x_ref, wf_ref, wb_ref, uf_ref, ub_ref,
                                bf_ref, bb_ref, wfc_f_ref, wfc_b_ref, bfc_ref,
                                out_ref):
    """Last bidirectional layer fused with the final Linear.

    Only the final hidden state of each direction is needed, so the per-step
    sequence is never written to HBM.  Dropout(0.3) is identity at inference.
    out = [hf | hb] @ W_fc^T + b_fc, computed as two dots (W_fc^T pre-split).
    """
    hf, hb = _bidir_recurrence(x_ref, wf_ref, wb_ref, uf_ref, ub_ref,
                               bf_ref, bb_ref)
    out = (jnp.dot(hf, wfc_f_ref[...], preferred_element_type=jnp.float32)
           + jnp.dot(hb, wfc_b_ref[...], preferred_element_type=jnp.float32)
           + bfc_ref[...])
    out_ref[...] = out.astype(out_ref.dtype)


# ----------------------------------------------------------------------------
# pallas_call wrappers (no grid: whole problem resident in VMEM, weights loaded
# once, single kernel invocation per layer)
# ----------------------------------------------------------------------------
def _vmem_spec():
    return pl.BlockSpec(memory_space=pltpu.MemorySpace.VMEM)


def bidir_rnn_layer(x, layer_params):
    """x: (P, S, B, Fp) -> (2, S, B, H) per-timestep bidirectional hidden."""
    wf, wb, uf, ub, bf, bb = layer_params
    P, S, B, Fp = x.shape
    H = uf.shape[0]
    return pl.pallas_call(
        _bidir_layer_kernel,
        out_shape=jax.ShapeDtypeStruct((2, S, B, H), jnp.float32),
        in_specs=[_vmem_spec()] * 7,
        out_specs=_vmem_spec(),
    )(x, wf, wb, uf, ub, bf, bb)


def bidir_rnn_last_layer_fc(x, layer_params, fc_params):
    """x: (P, S, B, Fp) -> (B, O): last layer recurrence + fused Linear."""
    wf, wb, uf, ub, bf, bb = layer_params
    wfc_f, wfc_b, bfc = fc_params
    P, S, B, Fp = x.shape
    O = wfc_f.shape[1]
    return pl.pallas_call(
        _bidir_last_layer_fc_kernel,
        out_shape=jax.ShapeDtypeStruct((B, O), jnp.float32),
        in_specs=[_vmem_spec()] * 10,
        out_specs=_vmem_spec(),
    )(x, wf, wb, uf, ub, bf, bb, wfc_f, wfc_b, bfc)


# ----------------------------------------------------------------------------
# Parameter init (deterministic, PyTorch-like U(-1/sqrt(H), 1/sqrt(H)))
# ----------------------------------------------------------------------------
def init_params(key, input_dim, hidden_dim, num_layers, output_dim):
    k = 1.0 / float(hidden_dim) ** 0.5
    layers = []
    for layer in range(num_layers):
        in_dim = input_dim if layer == 0 else 2 * hidden_dim
        P = 1 if layer == 0 else 2
        Fp = in_dim // P
        dir_w, dir_u, dir_b = [], [], []
        for _ in range(2):  # fwd, bwd
            key, k1, k2, k3, k4 = jax.random.split(key, 5)
            wih = jax.random.uniform(k1, (hidden_dim, in_dim), minval=-k, maxval=k)
            whh = jax.random.uniform(k2, (hidden_dim, hidden_dim), minval=-k, maxval=k)
            bih = jax.random.uniform(k3, (hidden_dim,), minval=-k, maxval=k)
            bhh = jax.random.uniform(k4, (hidden_dim,), minval=-k, maxval=k)
            # store W_ih^T split into P feature parts: (P, Fp, H)
            dir_w.append(wih.T.reshape(P, Fp, hidden_dim))
            dir_u.append(whh.T)                       # (H, H) = W_hh^T
            dir_b.append((bih + bhh)[None, :])        # (1, H)
        layers.append((dir_w[0], dir_w[1], dir_u[0], dir_u[1], dir_b[0], dir_b[1]))
    kf = 1.0 / float(2 * hidden_dim) ** 0.5
    key, k1, k2 = jax.random.split(key, 3)
    w_fc = jax.random.uniform(k1, (output_dim, 2 * hidden_dim), minval=-kf, maxval=kf)
    b_fc = jax.random.uniform(k2, (output_dim,), minval=-kf, maxval=kf)
    w_fc_t = w_fc.T                                    # (2H, O)
    fc = (w_fc_t[:hidden_dim, :], w_fc_t[hidden_dim:, :], b_fc[None, :])
    return {"layers": layers, "fc": fc}


# ----------------------------------------------------------------------------
# Forward pass (matches RNN.forward, inference semantics)
# ----------------------------------------------------------------------------
def rnn_forward(x, params):
    """x: (B, S, D) batch-first, like nn.RNN(batch_first=True). Returns (B, O)."""
    B = x.shape[0]
    # time-major + leading "feature parts" axis: (1, S, B, D)
    inp = jnp.transpose(x, (1, 0, 2)).astype(jnp.float32)[None]
    # Pad batch to sublane multiple: fills vreg/MXU rows; padded rows are
    # computed but never mix with real rows (the RNN is row-wise in batch).
    Bp = -(-B // SUBLANE) * SUBLANE
    if Bp != B:
        inp = jnp.pad(inp, ((0, 0), (0, 0), (0, Bp - B), (0, 0)))

    layers = params["layers"]
    out = None
    for li, lp in enumerate(layers):
        if li < len(layers) - 1:
            inp = bidir_rnn_layer(inp, lp)              # (2, S, Bp, H)
        else:
            # nn.Dropout(0.3) is identity at inference; Linear fused in-kernel.
            # TODO(synk): training-mode dropout mask not implemented.
            out = bidir_rnn_last_layer_fc(inp, lp, params["fc"])  # (Bp, O)
    return out[:B]


# ----------------------------------------------------------------------------
# Pure-JAX reference (for correctness check)
# ----------------------------------------------------------------------------
def _rnn_dir_ref(x_tm, wih_t, whh_t, b):
    B = x_tm.shape[1]
    H = whh_t.shape[0]

    def step(h, x_t):
        h_new = jnp.tanh(x_t @ wih_t + h @ whh_t + b)
        return h_new, h_new

    _, hs = jax.lax.scan(step, jnp.zeros((B, H), jnp.float32), x_tm)
    return hs


def rnn_forward_ref(x, params):
    inp = jnp.transpose(x, (1, 0, 2)).astype(jnp.float32)   # (S, B, D)
    last_fwd = last_bwd = None
    for (wf, wb, uf, ub, bf, bb) in params["layers"]:
        P, Fp, H = wf.shape
        wf_full = wf.reshape(P * Fp, H)
        wb_full = wb.reshape(P * Fp, H)
        h_fwd = _rnn_dir_ref(inp, wf_full, uf, bf)
        h_bwd_rev = _rnn_dir_ref(inp[::-1], wb_full, ub, bb)
        last_fwd, last_bwd = h_fwd[-1], h_bwd_rev[-1]     # hidden[-2], hidden[-1]
        inp = jnp.concatenate([h_fwd, h_bwd_rev[::-1]], axis=-1)
    wfc_f, wfc_b, bfc = params["fc"]
    return last_fwd @ wfc_f + last_bwd @ wfc_b + bfc


# ----------------------------------------------------------------------------
if __name__ == "__main__":
    BATCH, SEQ, INPUT_DIM, HIDDEN_DIM, NUM_LAYERS, OUTPUT_DIM = 2, 8, 16, 32, 2, 5

    key = jax.random.PRNGKey(0)
    key, pkey, xkey = jax.random.split(key, 3)
    params = init_params(pkey, INPUT_DIM, HIDDEN_DIM, NUM_LAYERS, OUTPUT_DIM)
    x = jax.random.normal(xkey, (BATCH, SEQ, INPUT_DIM), dtype=jnp.float32)

    out = jax.block_until_ready(rnn_forward(x, params))
    ref = jax.block_until_ready(rnn_forward_ref(x, params))

    assert out.shape == (BATCH, OUTPUT_DIM), out.shape
    assert jnp.allclose(out, ref, atol=2e-5, rtol=2e-5), (out, ref)

    print("KERNEL_OK")
</pallas_src>

<mosaic_0001>
module attributes {stable_mosaic.version = 11 : i64} {
  func.func @_bidir_layer_kernel(%arg0: memref<1x8x8x16xf32, #tpu.memory_space<vmem>>, %arg1: memref<1x16x32xf32, #tpu.memory_space<vmem>>, %arg2: memref<1x16x32xf32, #tpu.memory_space<vmem>>, %arg3: memref<32x32xf32, #tpu.memory_space<vmem>>, %arg4: memref<32x32xf32, #tpu.memory_space<vmem>>, %arg5: memref<1x32xf32, #tpu.memory_space<vmem>>, %arg6: memref<1x32xf32, #tpu.memory_space<vmem>>, %arg7: memref<2x8x8x32xf32, #tpu.memory_space<vmem>>) attributes {dimension_semantics = [], scalar_prefetch = 0 : i64, scratch_operands = 0 : i64, tpu.core_type = #tpu.core_type<tc>} {
    %c0 = arith.constant 0 : index
    %c0_0 = arith.constant 0 : index
    %0 = vector.load %arg5[%c0, %c0_0] : memref<1x32xf32, #tpu.memory_space<vmem>>, vector<1x32xf32>
    %c0_1 = arith.constant 0 : index
    %c0_2 = arith.constant 0 : index
    %1 = vector.load %arg6[%c0_1, %c0_2] : memref<1x32xf32, #tpu.memory_space<vmem>>, vector<1x32xf32>
    %c0_3 = arith.constant 0 : index
    %c0_4 = arith.constant 0 : index
    %c0_5 = arith.constant 0 : index
    %c0_6 = arith.constant 0 : index
    %2 = vector.load %arg0[%c0_3, %c0_4, %c0_5, %c0_6] : memref<1x8x8x16xf32, #tpu.memory_space<vmem>>, vector<1x8x8x16xf32>
    %3 = vector.shape_cast %2 : vector<1x8x8x16xf32> to vector<8x8x16xf32>
    %4 = vector.shape_cast %3 : vector<8x8x16xf32> to vector<64x16xf32>
    %c0_7 = arith.constant 0 : index
    %c0_8 = arith.constant 0 : index
    %c0_9 = arith.constant 0 : index
    %5 = vector.load %arg1[%c0_7, %c0_8, %c0_9] : memref<1x16x32xf32, #tpu.memory_space<vmem>>, vector<1x16x32xf32>
    %6 = vector.shape_cast %5 : vector<1x16x32xf32> to vector<16x32xf32>
    %cst = arith.constant dense<0.000000e+00> : vector<64x32xf32>
    %7 = tpu.matmul %4, %6, %cst {dimension_numbers = #tpu.dot_dimension_numbers<[1], [0], [0], [1], [0, 0, 1, 1], [], []>} : vector<64x16xf32>, vector<16x32xf32>, vector<64x32xf32> -> vector<64x32xf32>
    %8 = vector.broadcast %0 : vector<1x32xf32> to vector<64x32xf32>
    %9 = arith.addf %8, %7 : vector<64x32xf32>
    %c0_10 = arith.constant 0 : index
    %c0_11 = arith.constant 0 : index
    %c0_12 = arith.constant 0 : index
    %10 = vector.load %arg2[%c0_10, %c0_11, %c0_12] : memref<1x16x32xf32, #tpu.memory_space<vmem>>, vector<1x16x32xf32>
    %11 = vector.shape_cast %10 : vector<1x16x32xf32> to vector<16x32xf32>
    %cst_13 = arith.constant dense<0.000000e+00> : vector<64x32xf32>
    %12 = tpu.matmul %4, %11, %cst_13 {dimension_numbers = #tpu.dot_dimension_numbers<[1], [0], [0], [1], [0, 0, 1, 1], [], []>} : vector<64x16xf32>, vector<16x32xf32>, vector<64x32xf32> -> vector<64x32xf32>
    %13 = vector.broadcast %1 : vector<1x32xf32> to vector<64x32xf32>
    %14 = arith.addf %13, %12 : vector<64x32xf32>
    %c0_14 = arith.constant 0 : index
    %c0_15 = arith.constant 0 : index
    %15 = vector.load %arg3[%c0_14, %c0_15] : memref<32x32xf32, #tpu.memory_space<vmem>>, vector<32x32xf32>
    %c0_16 = arith.constant 0 : index
    %c0_17 = arith.constant 0 : index
    %16 = vector.load %arg4[%c0_16, %c0_17] : memref<32x32xf32, #tpu.memory_space<vmem>>, vector<32x32xf32>
    %cst_18 = arith.constant 0.000000e+00 : f32
    %17 = vector.broadcast %cst_18 : f32 to vector<8x32xf32>
    %cst_19 = arith.constant 0.000000e+00 : f32
    %18 = vector.broadcast %cst_19 : f32 to vector<8x32xf32>
    %19 = vector.extract_strided_slice %9 {offsets = [0, 0], sizes = [8, 32], strides = [1, 1]} : vector<64x32xf32> to vector<8x32xf32>
    %cst_20 = arith.constant dense<0.000000e+00> : vector<8x32xf32>
    %20 = tpu.matmul %17, %15, %cst_20 {dimension_numbers = #tpu.dot_dimension_numbers<[1], [0], [0], [1], [0, 0, 1, 1], [], []>} : vector<8x32xf32>, vector<32x32xf32>, vector<8x32xf32> -> vector<8x32xf32>
    %21 = arith.addf %19, %20 : vector<8x32xf32>
    %22 = math.tanh %21 : vector<8x32xf32>
    %23 = vector.extract_strided_slice %14 {offsets = [56, 0], sizes = [8, 32], strides = [1, 1]} : vector<64x32xf32> to vector<8x32xf32>
    %cst_21 = arith.constant dense<0.000000e+00> : vector<8x32xf32>
    %24 = tpu.matmul %18, %16, %cst_21 {dimension_numbers = #tpu.dot_dimension_numbers<[1], [0], [0], [1], [0, 0, 1, 1], [], []>} : vector<8x32xf32>, vector<32x32xf32>, vector<8x32xf32> -> vector<8x32xf32>
    %25 = arith.addf %23, %24 : vector<8x32xf32>
    %26 = math.tanh %25 : vector<8x32xf32>
    %c0_22 = arith.constant 0 : index
    %c0_23 = arith.constant 0 : index
    %c0_24 = arith.constant 0 : index
    %c0_25 = arith.constant 0 : index
    %27 = vector.load %arg7[%c0_22, %c0_23, %c0_24, %c0_25] : memref<2x8x8x32xf32, #tpu.memory_space<vmem>>, vector<1x1x8x32xf32>
    %28 = vector.shape_cast %27 : vector<1x1x8x32xf32> to vector<8x32xf32>
    %29 = vector.shape_cast %22 : vector<8x32xf32> to vector<1x1x8x32xf32>
    tpu.vector_store %arg7[%c0_22, %c0_23, %c0_24, %c0_25], %29 {strides = array<i32>} : memref<2x8x8x32xf32, #tpu.memory_space<vmem>>, vector<1x1x8x32xf32>,
    %c1 = arith.constant 1 : index
    %c7 = arith.constant 7 : index
    %c0_26 = arith.constant 0 : index
    %c0_27 = arith.constant 0 : index
    %30 = vector.load %arg7[%c1, %c7, %c0_26, %c0_27] : memref<2x8x8x32xf32, #tpu.memory_space<vmem>>, vector<1x1x8x32xf32>
    %31 = vector.shape_cast %30 : vector<1x1x8x32xf32> to vector<8x32xf32>
    %32 = vector.shape_cast %26 : vector<8x32xf32> to vector<1x1x8x32xf32>
    tpu.vector_store %arg7[%c1, %c7, %c0_26, %c0_27], %32 {strides = array<i32>} : memref<2x8x8x32xf32, #tpu.memory_space<vmem>>, vector<1x1x8x32xf32>,
    %33 = vector.extract_strided_slice %9 {offsets = [8, 0], sizes = [8, 32], strides = [1, 1]} : vector<64x32xf32> to vector<8x32xf32>
    %cst_28 = arith.constant dense<0.000000e+00> : vector<8x32xf32>
    %34 = tpu.matmul %22, %15, %cst_28 {dimension_numbers = #tpu.dot_dimension_numbers<[1], [0], [0], [1], [0, 0, 1, 1], [], []>} : vector<8x32xf32>, vector<32x32xf32>, vector<8x32xf32> -> vector<8x32xf32>
    %35 = arith.addf %33, %34 : vector<8x32xf32>
    %36 = math.tanh %35 : vector<8x32xf32>
    %37 = vector.extract_strided_slice %14 {offsets = [48, 0], sizes = [8, 32], strides = [1, 1]} : vector<64x32xf32> to vector<8x32xf32>
    %cst_29 = arith.constant dense<0.000000e+00> : vector<8x32xf32>
    %38 = tpu.matmul %26, %16, %cst_29 {dimension_numbers = #tpu.dot_dimension_numbers<[1], [0], [0], [1], [0, 0, 1, 1], [], []>} : vector<8x32xf32>, vector<32x32xf32>, vector<8x32xf32> -> vector<8x32xf32>
    %39 = arith.addf %37, %38 : vector<8x32xf32>
    %40 = math.tanh %39 : vector<8x32xf32>
    %c0_30 = arith.constant 0 : index
    %c1_31 = arith.constant 1 : index
    %c0_32 = arith.constant 0 : index
    %c0_33 = arith.constant 0 : index
    %41 = vector.load %arg7[%c0_30, %c1_31, %c0_32, %c0_33] : memref<2x8x8x32xf32, #tpu.memory_space<vmem>>, vector<1x1x8x32xf32>
    %42 = vector.shape_cast %41 : vector<1x1x8x32xf32> to vector<8x32xf32>
    %43 = vector.shape_cast %36 : vector<8x32xf32> to vector<1x1x8x32xf32>
    tpu.vector_store %arg7[%c0_30, %c1_31, %c0_32, %c0_33], %43 {strides = array<i32>} : memref<2x8x8x32xf32, #tpu.memory_space<vmem>>, vector<1x1x8x32xf32>,
    %c1_34 = arith.constant 1 : index
    %c6 = arith.constant 6 : index
    %c0_35 = arith.constant 0 : index
    %c0_36 = arith.constant 0 : index
    %44 = vector.load %arg7[%c1_34, %c6, %c0_35, %c0_36] : memref<2x8x8x32xf32, #tpu.memory_space<vmem>>, vector<1x1x8x32xf32>
    %45 = vector.shape_cast %44 : vector<1x1x8x32xf32> to vector<8x32xf32>
    %46 = vector.shape_cast %40 : vector<8x32xf32> to vector<1x1x8x32xf32>
    tpu.vector_store %arg7[%c1_34, %c6, %c0_35, %c0_36], %46 {strides = array<i32>} : memref<2x8x8x32xf32, #tpu.memory_space<vmem>>, vector<1x1x8x32xf32>,
    %47 = vector.extract_strided_slice %9 {offsets = [16, 0], sizes = [8, 32], strides = [1, 1]} : vector<64x32xf32> to vector<8x32xf32>
    %cst_37 = arith.constant dense<0.000000e+00> : vector<8x32xf32>
    %48 = tpu.matmul %36, %15, %cst_37 {dimension_numbers = #tpu.dot_dimension_numbers<[1], [0], [0], [1], [0, 0, 1, 1], [], []>} : vector<8x32xf32>, vector<32x32xf32>, vector<8x32xf32> -> vector<8x32xf32>
    %49 = arith.addf %47, %48 : vector<8x32xf32>
    %50 = math.tanh %49 : vector<8x32xf32>
    %51 = vector.extract_strided_slice %14 {offsets = [40, 0], sizes = [8, 32], strides = [1, 1]} : vector<64x32xf32> to vector<8x32xf32>
    %cst_38 = arith.constant dense<0.000000e+00> : vector<8x32xf32>
    %52 = tpu.matmul %40, %16, %cst_38 {dimension_numbers = #tpu.dot_dimension_numbers<[1], [0], [0], [1], [0, 0, 1, 1], [], []>} : vector<8x32xf32>, vector<32x32xf32>, vector<8x32xf32> -> vector<8x32xf32>
    %53 = arith.addf %51, %52 : vector<8x32xf32>
    %54 = math.tanh %53 : vector<8x32xf32>
    %c0_39 = arith.constant 0 : index
    %c2 = arith.constant 2 : index
    %c0_40 = arith.constant 0 : index
    %c0_41 = arith.constant 0 : index
    %55 = vector.load %arg7[%c0_39, %c2, %c0_40, %c0_41] : memref<2x8x8x32xf32, #tpu.memory_space<vmem>>, vector<1x1x8x32xf32>
    %56 = vector.shape_cast %55 : vector<1x1x8x32xf32> to vector<8x32xf32>
    %57 = vector.shape_cast %50 : vector<8x32xf32> to vector<1x1x8x32xf32>
    tpu.vector_store %arg7[%c0_39, %c2, %c0_40, %c0_41], %57 {strides = array<i32>} : memref<2x8x8x32xf32, #tpu.memory_space<vmem>>, vector<1x1x8x32xf32>,
    %c1_42 = arith.constant 1 : index
    %c5 = arith.constant 5 : index
    %c0_43 = arith.constant 0 : index
    %c0_44 = arith.constant 0 : index
    %58 = vector.load %arg7[%c1_42, %c5, %c0_43, %c0_44] : memref<2x8x8x32xf32, #tpu.memory_space<vmem>>, vector<1x1x8x32xf32>
    %59 = vector.shape_cast %58 : vector<1x1x8x32xf32> to vector<8x32xf32>
    %60 = vector.shape_cast %54 : vector<8x32xf32> to vector<1x1x8x32xf32>
    tpu.vector_store %arg7[%c1_42, %c5, %c0_43, %c0_44], %60 {strides = array<i32>} : memref<2x8x8x32xf32, #tpu.memory_space<vmem>>, vector<1x1x8x32xf32>,
    %61 = vector.extract_strided_slice %9 {offsets = [24, 0], sizes = [8, 32], strides = [1, 1]} : vector<64x32xf32> to vector<8x32xf32>
    %cst_45 = arith.constant dense<0.000000e+00> : vector<8x32xf32>
    %62 = tpu.matmul %50, %15, %cst_45 {dimension_numbers = #tpu.dot_dimension_numbers<[1], [0], [0], [1], [0, 0, 1, 1], [], []>} : vector<8x32xf32>, vector<32x32xf32>, vector<8x32xf32> -> vector<8x32xf32>
    %63 = arith.addf %61, %62 : vector<8x32xf32>
    %64 = math.tanh %63 : vector<8x32xf32>
    %65 = vector.extract_strided_slice %14 {offsets = [32, 0], sizes = [8, 32], strides = [1, 1]} : vector<64x32xf32> to vector<8x32xf32>
    %cst_46 = arith.constant dense<0.000000e+00> : vector<8x32xf32>
    %66 = tpu.matmul %54, %16, %cst_46 {dimension_numbers = #tpu.dot_dimension_numbers<[1], [0], [0], [1], [0, 0, 1, 1], [], []>} : vector<8x32xf32>, vector<32x32xf32>, vector<8x32xf32> -> vector<8x32xf32>
    %67 = arith.addf %65, %66 : vector<8x32xf32>
    %68 = math.tanh %67 : vector<8x32xf32>
    %c0_47 = arith.constant 0 : index
    %c3 = arith.constant 3 : index
    %c0_48 = arith.constant 0 : index
    %c0_49 = arith.constant 0 : index
    %69 = vector.load %arg7[%c0_47, %c3, %c0_48, %c0_49] : memref<2x8x8x32xf32, #tpu.memory_space<vmem>>, vector<1x1x8x32xf32>
    %70 = vector.shape_cast %69 : vector<1x1x8x32xf32> to vector<8x32xf32>
    %71 = vector.shape_cast %64 : vector<8x32xf32> to vector<1x1x8x32xf32>
    tpu.vector_store %arg7[%c0_47, %c3, %c0_48, %c0_49], %71 {strides = array<i32>} : memref<2x8x8x32xf32, #tpu.memory_space<vmem>>, vector<1x1x8x32xf32>,
    %c1_50 = arith.constant 1 : index
    %c4 = arith.constant 4 : index
    %c0_51 = arith.constant 0 : index
    %c0_52 = arith.constant 0 : index
    %72 = vector.load %arg7[%c1_50, %c4, %c0_51, %c0_52] : memref<2x8x8x32xf32, #tpu.memory_space<vmem>>, vector<1x1x8x32xf32>
    %73 = vector.shape_cast %72 : vector<1x1x8x32xf32> to vector<8x32xf32>
    %74 = vector.shape_cast %68 : vector<8x32xf32> to vector<1x1x8x32xf32>
    tpu.vector_store %arg7[%c1_50, %c4, %c0_51, %c0_52], %74 {strides = array<i32>} : memref<2x8x8x32xf32, #tpu.memory_space<vmem>>, vector<1x1x8x32xf32>,
    %75 = vector.extract_strided_slice %9 {offsets = [32, 0], sizes = [8, 32], strides = [1, 1]} : vector<64x32xf32> to vector<8x32xf32>
    %cst_53 = arith.constant dense<0.000000e+00> : vector<8x32xf32>
    %76 = tpu.matmul %64, %15, %cst_53 {dimension_numbers = #tpu.dot_dimension_numbers<[1], [0], [0], [1], [0, 0, 1, 1], [], []>} : vector<8x32xf32>, vector<32x32xf32>, vector<8x32xf32> -> vector<8x32xf32>
    %77 = arith.addf %75, %76 : vector<8x32xf32>
    %78 = math.tanh %77 : vector<8x32xf32>
    %79 = vector.extract_strided_slice %14 {offsets = [24, 0], sizes = [8, 32], strides = [1, 1]} : vector<64x32xf32> to vector<8x32xf32>
    %cst_54 = arith.constant dense<0.000000e+00> : vector<8x32xf32>
    %80 = tpu.matmul %68, %16, %cst_54 {dimension_numbers = #tpu.dot_dimension_numbers<[1], [0], [0], [1], [0, 0, 1, 1], [], []>} : vector<8x32xf32>, vector<32x32xf32>, vector<8x32xf32> -> vector<8x32xf32>
    %81 = arith.addf %79, %80 : vector<8x32xf32>
    %82 = math.tanh %81 : vector<8x32xf32>
    %c0_55 = arith.constant 0 : index
    %c4_56 = arith.constant 4 : index
    %c0_57 = arith.constant 0 : index
    %c0_58 = arith.constant 0 : index
    %83 = vector.load %arg7[%c0_55, %c4_56, %c0_57, %c0_58] : memref<2x8x8x32xf32, #tpu.memory_space<vmem>>, vector<1x1x8x32xf32>
    %84 = vector.shape_cast %83 : vector<1x1x8x32xf32> to vector<8x32xf32>
    %85 = vector.shape_cast %78 : vector<8x32xf32> to vector<1x1x8x32xf32>
    tpu.vector_store %arg7[%c0_55, %c4_56, %c0_57, %c0_58], %85 {strides = array<i32>} : memref<2x8x8x32xf32, #tpu.memory_space<vmem>>, vector<1x1x8x32xf32>,
    %c1_59 = arith.constant 1 : index
    %c3_60 = arith.constant 3 : index
    %c0_61 = arith.constant 0 : index
    %c0_62 = arith.constant 0 : index
    %86 = vector.load %arg7[%c1_59, %c3_60, %c0_61, %c0_62] : memref<2x8x8x32xf32, #tpu.memory_space<vmem>>, vector<1x1x8x32xf32>
    %87 = vector.shape_cast %86 : vector<1x1x8x32xf32> to vector<8x32xf32>
    %88 = vector.shape_cast %82 : vector<8x32xf32> to vector<1x1x8x32xf32>
    tpu.vector_store %arg7[%c1_59, %c3_60, %c0_61, %c0_62], %88 {strides = array<i32>} : memref<2x8x8x32xf32, #tpu.memory_space<vmem>>, vector<1x1x8x32xf32>,
    %89 = vector.extract_strided_slice %9 {offsets = [40, 0], sizes = [8, 32], strides = [1, 1]} : vector<64x32xf32> to vector<8x32xf32>
    %cst_63 = arith.constant dense<0.000000e+00> : vector<8x32xf32>
    %90 = tpu.matmul %78, %15, %cst_63 {dimension_numbers = #tpu.dot_dimension_numbers<[1], [0], [0], [1], [0, 0, 1, 1], [], []>} : vector<8x32xf32>, vector<32x32xf32>, vector<8x32xf32> -> vector<8x32xf32>
    %91 = arith.addf %89, %90 : vector<8x32xf32>
    %92 = math.tanh %91 : vector<8x32xf32>
    %93 = vector.extract_strided_slice %14 {offsets = [16, 0], sizes = [8, 32], strides = [1, 1]} : vector<64x32xf32> to vector<8x32xf32>
    %cst_64 = arith.constant dense<0.000000e+00> : vector<8x32xf32>
    %94 = tpu.matmul %82, %16, %cst_64 {dimension_numbers = #tpu.dot_dimension_numbers<[1], [0], [0], [1], [0, 0, 1, 1], [], []>} : vector<8x32xf32>, vector<32x32xf32>, vector<8x32xf32> -> vector<8x32xf32>
    %95 = arith.addf %93, %94 : vector<8x32xf32>
    %96 = math.tanh %95 : vector<8x32xf32>
    %c0_65 = arith.constant 0 : index
    %c5_66 = arith.constant 5 : index
    %c0_67 = arith.constant 0 : index
    %c0_68 = arith.constant 0 : index
    %97 = vector.load %arg7[%c0_65, %c5_66, %c0_67, %c0_68] : memref<2x8x8x32xf32, #tpu.memory_space<vmem>>, vector<1x1x8x32xf32>
    %98 = vector.shape_cast %97 : vector<1x1x8x32xf32> to vector<8x32xf32>
    %99 = vector.shape_cast %92 : vector<8x32xf32> to vector<1x1x8x32xf32>
    tpu.vector_store %arg7[%c0_65, %c5_66, %c0_67, %c0_68], %99 {strides = array<i32>} : memref<2x8x8x32xf32, #tpu.memory_space<vmem>>, vector<1x1x8x32xf32>,
    %c1_69 = arith.constant 1 : index
    %c2_70 = arith.constant 2 : index
    %c0_71 = arith.constant 0 : index
    %c0_72 = arith.constant 0 : index
    %100 = vector.load %arg7[%c1_69, %c2_70, %c0_71, %c0_72] : memref<2x8x8x32xf32, #tpu.memory_space<vmem>>, vector<1x1x8x32xf32>
    %101 = vector.shape_cast %100 : vector<1x1x8x32xf32> to vector<8x32xf32>
    %102 = vector.shape_cast %96 : vector<8x32xf32> to vector<1x1x8x32xf32>
    tpu.vector_store %arg7[%c1_69, %c2_70, %c0_71, %c0_72], %102 {strides = array<i32>} : memref<2x8x8x32xf32, #tpu.memory_space<vmem>>, vector<1x1x8x32xf32>,
    %103 = vector.extract_strided_slice %9 {offsets = [48, 0], sizes = [8, 32], strides = [1, 1]} : vector<64x32xf32> to vector<8x32xf32>
    %cst_73 = arith.constant dense<0.000000e+00> : vector<8x32xf32>
    %104 = tpu.matmul %92, %15, %cst_73 {dimension_numbers = #tpu.dot_dimension_numbers<[1], [0], [0], [1], [0, 0, 1, 1], [], []>} : vector<8x32xf32>, vector<32x32xf32>, vector<8x32xf32> -> vector<8x32xf32>
    %105 = arith.addf %103, %104 : vector<8x32xf32>
    %106 = math.tanh %105 : vector<8x32xf32>
    %107 = vector.extract_strided_slice %14 {offsets = [8, 0], sizes = [8, 32], strides = [1, 1]} : vector<64x32xf32> to vector<8x32xf32>
    %cst_74 = arith.constant dense<0.000000e+00> : vector<8x32xf32>
    %108 = tpu.matmul %96, %16, %cst_74 {dimension_numbers = #tpu.dot_dimension_numbers<[1], [0], [0], [1], [0, 0, 1, 1], [], []>} : vector<8x32xf32>, vector<32x32xf32>, vector<8x32xf32> -> vector<8x32xf32>
    %109 = arith.addf %107, %108 : vector<8x32xf32>
    %110 = math.tanh %109 : vector<8x32xf32>
    %c0_75 = arith.constant 0 : index
    %c6_76 = arith.constant 6 : index
    %c0_77 = arith.constant 0 : index
    %c0_78 = arith.constant 0 : index
    %111 = vector.load %arg7[%c0_75, %c6_76, %c0_77, %c0_78] : memref<2x8x8x32xf32, #tpu.memory_space<vmem>>, vector<1x1x8x32xf32>
    %112 = vector.shape_cast %111 : vector<1x1x8x32xf32> to vector<8x32xf32>
    %113 = vector.shape_cast %106 : vector<8x32xf32> to vector<1x1x8x32xf32>
    tpu.vector_store %arg7[%c0_75, %c6_76, %c0_77, %c0_78], %113 {strides = array<i32>} : memref<2x8x8x32xf32, #tpu.memory_space<vmem>>, vector<1x1x8x32xf32>,
    %c1_79 = arith.constant 1 : index
    %c1_80 = arith.constant 1 : index
    %c0_81 = arith.constant 0 : index
    %c0_82 = arith.constant 0 : index
    %114 = vector.load %arg7[%c1_79, %c1_80, %c0_81, %c0_82] : memref<2x8x8x32xf32, #tpu.memory_space<vmem>>, vector<1x1x8x32xf32>
    %115 = vector.shape_cast %114 : vector<1x1x8x32xf32> to vector<8x32xf32>
    %116 = vector.shape_cast %110 : vector<8x32xf32> to vector<1x1x8x32xf32>
    tpu.vector_store %arg7[%c1_79, %c1_80, %c0_81, %c0_82], %116 {strides = array<i32>} : memref<2x8x8x32xf32, #tpu.memory_space<vmem>>, vector<1x1x8x32xf32>,
    %117 = vector.extract_strided_slice %9 {offsets = [56, 0], sizes = [8, 32], strides = [1, 1]} : vector<64x32xf32> to vector<8x32xf32>
    %cst_83 = arith.constant dense<0.000000e+00> : vector<8x32xf32>
    %118 = tpu.matmul %106, %15, %cst_83 {dimension_numbers = #tpu.dot_dimension_numbers<[1], [0], [0], [1], [0, 0, 1, 1], [], []>} : vector<8x32xf32>, vector<32x32xf32>, vector<8x32xf32> -> vector<8x32xf32>
    %119 = arith.addf %117, %118 : vector<8x32xf32>
    %120 = math.tanh %119 : vector<8x32xf32>
    %121 = vector.extract_strided_slice %14 {offsets = [0, 0], sizes = [8, 32], strides = [1, 1]} : vector<64x32xf32> to vector<8x32xf32>
    %cst_84 = arith.constant dense<0.000000e+00> : vector<8x32xf32>
    %122 = tpu.matmul %110, %16, %cst_84 {dimension_numbers = #tpu.dot_dimension_numbers<[1], [0], [0], [1], [0, 0, 1, 1], [], []>} : vector<8x32xf32>, vector<32x32xf32>, vector<8x32xf32> -> vector<8x32xf32>
    %123 = arith.addf %121, %122 : vector<8x32xf32>
    %124 = math.tanh %123 : vector<8x32xf32>
    %c0_85 = arith.constant 0 : index
    %c7_86 = arith.constant 7 : index
    %c0_87 = arith.constant 0 : index
    %c0_88 = arith.constant 0 : index
    %125 = vector.load %arg7[%c0_85, %c7_86, %c0_87, %c0_88] : memref<2x8x8x32xf32, #tpu.memory_space<vmem>>, vector<1x1x8x32xf32>
    %126 = vector.shape_cast %125 : vector<1x1x8x32xf32> to vector<8x32xf32>
    %127 = vector.shape_cast %120 : vector<8x32xf32> to vector<1x1x8x32xf32>
    tpu.vector_store %arg7[%c0_85, %c7_86, %c0_87, %c0_88], %127 {strides = array<i32>} : memref<2x8x8x32xf32, #tpu.memory_space<vmem>>, vector<1x1x8x32xf32>,
    %c1_89 = arith.constant 1 : index
    %c0_90 = arith.constant 0 : index
    %c0_91 = arith.constant 0 : index
    %c0_92 = arith.constant 0 : index
    %128 = vector.load %arg7[%c1_89, %c0_90, %c0_91, %c0_92] : memref<2x8x8x32xf32, #tpu.memory_space<vmem>>, vector<1x1x8x32xf32>
    %129 = vector.shape_cast %128 : vector<1x1x8x32xf32> to vector<8x32xf32>
    %130 = vector.shape_cast %124 : vector<8x32xf32> to vector<1x1x8x32xf32>
    tpu.vector_store %arg7[%c1_89, %c0_90, %c0_91, %c0_92], %130 {strides = array<i32>} : memref<2x8x8x32xf32, #tpu.memory_space<vmem>>, vector<1x1x8x32xf32>,
    return
  }
}

</mosaic_0001>

<bundles_post_ra>
// kernel: tpu_custom_call.1
= control target key start
LH: loop header
LB: loop body
LE: loop exit
PB: predicated region body
PF: predicated region fallthrough
CT: control target
= control target key end

     0   :  { %12 = vsyncpa [#allocation3], 0  ;;  %s2604_s0 = inlined_call_operand.hbm [shape: f32[1,8,8,16], index: 0, kind: input, shape index: {}]   ;;  %s2605_s1 = inlined_call_operand.hbm [shape: f32[1,16,32], index: 1, kind: input, shape index: {}]   ;;  %s2606_s2 = inlined_call_operand.hbm [shape: f32[1,16,32], index: 2, kind: input, shape index: {}]   ;;  %s2607_s3 = inlined_call_operand.hbm [shape: f32[32,32], index: 3, kind: input, shape index: {}]   ;;  %s2608_s4 = inlined_call_operand.hbm [shape: f32[32,32], index: 4, kind: input, shape index: {}]   ;;  %s2609_s5 = inlined_call_operand.vmem [shape: f32[1,32], index: 5, kind: input, shape index: {}]   ;;  %s2610_s6 = inlined_call_operand.vmem [shape: f32[1,32], index: 6, kind: input, shape index: {}]   ;;  %s2611_s7 = inlined_call_operand.hbm [shape: f32[2,8,8,32], index: 7, kind: output, shape index: {}]  }
   0x1   :  { %13 = vsyncpa [#allocation6], 0 }
   0x2   :  { %14 = vsyncpa [#allocation9], 0 }
   0x3   :  { %15 = vsyncpa [#allocation4], 0  ;;  %s2255_s24 = smov [#allocation5]   ;;  %s2256_s26 = smov [#allocation8]  }
   0x4   :  { %s33_s25 = sshll.u32 %s2255_s24, 4  ;;  %s57_s27 = sshll.u32 %s2256_s26, 4  ;;  %s34_s25 = int_to_ptr.vmem [resolvable:$true] %s33_s25  ;;  %s2306_s27 = int_to_ptr.vmem [resolvable:$true] %s57_s27 }
   0x5   :  { %s2115_s30 = scalar_lea.hbm %s2605_s1, 256 }
   0x6   :  { %p2116_p0 = scmp.ne.s32.totalorder %s2605_s1, %s2115_s30  ;;  %p2119_p1 = scmp.lt.u32.totalorder %s2115_s30, %s2605_s1 }
   0x8   :  { %p2121_p2 = pnand %p2119_p1, %p2116_p0 }
   0xa   :  { %2124 = shalt.err (!%p2121_p2)
}
   0xb   :  { %s2125_s12 = scalar_lea.vmem %s34_s25, 256  ;;  %p2130_p4 = scmp.lt.s32.totalorder %s34_s25, %s34_s25 }
   0xc   :  { %p2126_p3 = scmp.ne.s32.totalorder %s34_s25, %s2125_s12  ;;  %p2131_p5 = scmp.lt.s32.totalorder %s2125_s12, %s2125_s12 }
   0xe   :  { %p2132_p6 = por %p2131_p5, %p2130_p4 }
  0x10   :  { %p2133_p7 = pnand %p2132_p6, %p2126_p3 }
  0x12   :  { %2136 = shalt.err (!%p2133_p7)
}
  0x13   :  { %s2257_s13 = smov 128   ;;  %s2258_s14 = smov 8  }
  0x14   :  { %39 = dma.hbm_to_vmem [thread:$0]  %s2605_s1, 256, %s34_s25, [#allocation6], %s2257_s13, %s2257_s13, %s2258_s14  }
  0x15   :  { %s2137_s19 = scalar_lea.hbm %s2607_s3, 512 }
  0x16   :  { %p2138_p8 = scmp.ne.s32.totalorder %s2607_s3, %s2137_s19  ;;  %p2141_p9 = scmp.lt.u32.totalorder %s2137_s19, %s2607_s3 }
  0x18   :  { %p2143_p10 = pnand %p2141_p9, %p2138_p8 }
  0x1a   :  { %2146 = shalt.err (!%p2143_p10)
}
  0x1b   :  { %s2147_s24 = scalar_lea.vmem %s2306_s27, 512  ;;  %p2152_p12 = scmp.lt.s32.totalorder %s2306_s27, %s2306_s27 }
  0x1c   :  { %p2148_p11 = scmp.ne.s32.totalorder %s2306_s27, %s2147_s24  ;;  %p2153_p13 = scmp.lt.s32.totalorder %s2147_s24, %s2147_s24 }
  0x1e   :  { %p2154_p0 = por %p2153_p13, %p2152_p12 }
  0x20   :  { %p2155_p1 = pnand %p2154_p0, %p2148_p11 }
  0x22   :  { %2158 = shalt.err (!%p2155_p1)
}
  0x23   :  { %63 = dma.hbm_to_vmem [thread:$0]  %s2607_s3, 512, %s2306_s27, [#allocation9], %s2257_s13, %s2257_s13, %s2258_s14  }
  0x24   :  { %s2259_s26 = smov [#allocation2]   ;;  %s2260_s29 = smov [#allocation7]  }
  0x25   :  { %s21_s28 = sshll.u32 %s2259_s26, 4  ;;  %s45_s30 = sshll.u32 %s2260_s29, 4  ;;  %s22_s28 = int_to_ptr.vmem [resolvable:$true] %s21_s28  ;;  %s2343_s30 = int_to_ptr.vmem [resolvable:$true] %s45_s30 }
  0x26   :  { %s2159_s10 = scalar_lea.hbm %s2604_s0, 1024 }
  0x27   :  { %p2160_p2 = scmp.ne.s32.totalorder %s2604_s0, %s2159_s10  ;;  %p2163_p3 = scmp.lt.u32.totalorder %s2159_s10, %s2604_s0 }
  0x29   :  { %p2165_p4 = pnand %p2163_p3, %p2160_p2 }
  0x2b   :  { %2168 = shalt.err (!%p2165_p4)
}
  0x2c   :  { %s2169_s3 = scalar_lea.vmem %s22_s28, 1024  ;;  %p2174_p6 = scmp.lt.s32.totalorder %s22_s28, %s22_s28 }
  0x2d   :  { %p2170_p5 = scmp.ne.s32.totalorder %s22_s28, %s2169_s3  ;;  %p2175_p7 = scmp.lt.s32.totalorder %s2169_s3, %s2169_s3 }
  0x2f   :  { %p2176_p8 = por %p2175_p7, %p2174_p6 }
  0x31   :  { %p2177_p9 = pnand %p2176_p8, %p2170_p5 }
  0x33   :  { %2180 = shalt.err (!%p2177_p9)
}
  0x34   :  { %27 = dma.hbm_to_vmem [thread:$0]  %s2604_s0, 1024, %s22_s28, [#allocation3], %s2257_s13, %s2257_s13, %s2258_s14  }
  0x35   :  { %s2181_s20 = scalar_lea.hbm %s2606_s2, 256 }
  0x36   :  { %p2182_p10 = scmp.ne.s32.totalorder %s2606_s2, %s2181_s20  ;;  %p2185_p11 = scmp.lt.u32.totalorder %s2181_s20, %s2606_s2 }
  0x38   :  { %p2187_p12 = pnand %p2185_p11, %p2182_p10 }
  0x3a   :  { %2190 = shalt.err (!%p2187_p12)
}
  0x3b   :  { %s2191_s1 = scalar_lea.vmem %s2343_s30, 256  ;;  %p2196_p0 = scmp.lt.s32.totalorder %s2343_s30, %s2343_s30 }
  0x3c   :  { %p2192_p13 = scmp.ne.s32.totalorder %s2343_s30, %s2191_s1  ;;  %p2197_p1 = scmp.lt.s32.totalorder %s2191_s1, %s2191_s1 }
  0x3e   :  { %p2198_p2 = por %p2197_p1, %p2196_p0 }
  0x40   :  { %p2199_p3 = pnand %p2198_p2, %p2192_p13 }
  0x42   :  { %2202 = shalt.err (!%p2199_p3)
}
  0x43   :  { %51 = dma.hbm_to_vmem [thread:$0]  %s2606_s2, 256, %s2343_s30, [#allocation6], %s2257_s13, %s2257_s13, %s2258_s14  }
  0x44   :  { %s2261_s26 = smov [#allocation10]   ;;  %s2203_s9 = scalar_lea.hbm %s2608_s4, 512 }
  0x45   :  { %s69_s28 = sshll.u32 %s2261_s26, 4  ;;  %p2204_p4 = scmp.ne.s32.totalorder %s2608_s4, %s2203_s9  ;;  %s70_s28 = int_to_ptr.vmem [resolvable:$true] %s69_s28 }
  0x46   :  { %p2207_p5 = scmp.lt.u32.totalorder %s2203_s9, %s2608_s4 }
  0x48   :  { %p2209_p6 = pnand %p2207_p5, %p2204_p4 }
  0x4a   :  { %2212 = shalt.err (!%p2209_p6)
}
  0x4b   :  { %s2213_s16 = scalar_lea.vmem %s70_s28, 512  ;;  %p2218_p8 = scmp.lt.s32.totalorder %s70_s28, %s70_s28 }
  0x4c   :  { %p2214_p7 = scmp.ne.s32.totalorder %s70_s28, %s2213_s16  ;;  %p2219_p9 = scmp.lt.s32.totalorder %s2213_s16, %s2213_s16 }
  0x4e   :  { %p2220_p10 = por %p2219_p9, %p2218_p8 }
  0x50   :  { %p2221_p11 = pnand %p2220_p10, %p2214_p7 }
  0x52   :  { %2224 = shalt.err (!%p2221_p11)
}
  0x53   :  { %75 = dma.hbm_to_vmem [thread:$0]  %s2608_s4, 512, %s70_s28, [#allocation9], %s2257_s13, %s2257_s13, %s2258_s14  }
  0x54   :  { %2247 = dma.done.wait [#allocation3], 1024  }
  0x55   :  { %2248 = vsyncadd [#allocation3], 4294966272 }
  0x56   :  { %2249 = dma.done.wait [#allocation6], 512  }
  0x57   :  { %2250 = vsyncadd [#allocation6], 4294966784 }
  0x58   :  { %2251 = dma.done.wait [#allocation9], 1024  }
  0x59   :  { %2252 = vsyncadd [#allocation9], 4294966272  ;;  %vm107_vm0 = vcmask 130048   ;;  %v105_v0 = vld [vmem:[#allocation5] sm:$0xff]  ;;  %v106_v1 = vld [vmem:[#allocation5 + $0x8] sm:$0xff]  ;;  %v2262_v13 = vmov 0.0|0.0  }
  0x5a   :  { %v251_v2 = vld [vmem:[#allocation7] sm:$0xff]  ;;  %v1968_v3 = vpack.c.bf16 %v106_v1, %v105_v0  ;;  %v252_v4 = vld [vmem:[#allocation7 + $0x8] sm:$0xff]  ;;  %v97_v5 = vld [vmem:[#allocation2] sm:$0xff]  ;;  %vm2263_vm1 = vmmov 0   ;;  %v2264_v27 = vmov 0.0   ;;  %vm380_vm2 = vcmask 261120  }
  0x5b   :  { %v1972_v6 = vpack.c.bf16 %v252_v4, %v251_v2  ;;  %1764 = vmatprep.mubr.msk.f32.mxu0 %vm107_vm0, %v97_v5  ;;  %1780 = vmatprep.mubr.msk.f32.mxu1 %vm107_vm0, %v97_v5  ;;  %v372_v7 = vld [vmem:[#allocation8] sm:$0xff]  ;;  %v373_v8 = vld [vmem:[#allocation8 + $0x8] sm:$0xff]  ;;  %v99_v15 = vld [vmem:[#allocation2 + $0x10] sm:$0xff] }
  0x5c   :  { %v376_v9 = vld [vmem:[#allocation10] sm:$0xff]  ;;  %1969 = vmatprep.subr.bf16.mxu0 %v1968_v3  ;;  %v377_v10 = vld [vmem:[#allocation10 + $0x8] sm:$0xff]  ;;  %v2397_v12 = vpack.c.bf16 %v373_v8, %v372_v7  ;;  %v374_v16 = vld [vmem:[#allocation8 + $0x10] sm:$0xff] }
  0x5d   :  { %1973 = vmatprep.subr.bf16.mxu1 %v1972_v6  ;;  %1971 = vmatpush3.bf16.msra.mxu0 %v1968_v3  ;;  %v98_v11 = vld [vmem:[#allocation2 + $0x8] sm:$0xff]  ;;  %v2400_v14 = vpack.c.bf16 %v377_v10, %v376_v9  ;;  %v375_v17 = vld [vmem:[#allocation8 + $0x18] sm:$0xff]  ;;  %v378_v18 = vld [vmem:[#allocation10 + $0x10] sm:$0xff] }
  0x5e   :  { %1975 = vmatpush3.bf16.msra.mxu1 %v1972_v6  ;;  %1976 = vmatprep.subr.bf16.mxu0 %v2262_v13  ;;  %v379_v19 = vld [vmem:[#allocation10 + $0x18] sm:$0xff]  ;;  %v101_v21 = vld [vmem:[#allocation2 + $0x20] sm:$0xff]  ;;  %v2408_v22 = vpack.c.bf16 %v375_v17, %v374_v16  ;;  %v102_v24 = vld [vmem:[#allocation2 + $0x28] sm:$0xff] }
  0x5f   :  { %1982 = vmatprep.subr.bf16.mxu1 %v2262_v13  ;;  %v100_v20 = vld [vmem:[#allocation2 + $0x18] sm:$0xff]  ;;  %v2412_v23 = vpack.c.bf16 %v379_v19, %v378_v18  ;;  %v103_v25 = vld [vmem:[#allocation2 + $0x30] sm:$0xff]  ;;  %v1636_v28 = vld [vmem:[%s2609_s5] ss:$0 sm:$0xff]  ;;  %s2265_s5 = smov [#allocation11]  }
  0x60   :  { %1765 = vmatmul.mubr.msk.f32.vlgmr.msra.gmra.mrb[0].mxu0 %vm107_vm0, %v98_v11  ;;  %v104_v26 = vld [vmem:[#allocation2 + $0x38] sm:$0xff]  ;;  %v1645_v29 = vld [vmem:[%s2610_s6] ss:$0 sm:$0xff]  ;;  %s1614_s6 = sshll.u32 %s2265_s5, 4  ;;  %s1615_s6 = int_to_ptr.vmem [resolvable:$true] %s1614_s6 }
  0x61   :  { %1781 = vmatmul.mubr.msk.f32.vlgmr.msra.gmra.mrb[0].mxu1 %vm107_vm0, %v98_v11  ;;  %1978 = vmatpush3.bf16.msra.mxu0 %v2397_v12  ;;  %s2225_s18 = scalar_lea.vmem %s1615_s6, 2048  ;;  %p2230_p13 = scmp.lt.s32.totalorder %s1615_s6, %s1615_s6 }
  0x62   :  { %1984 = vmatpush3.bf16.msra.mxu1 %v2400_v14  ;;  %1767 = vmatprep.mubr.msk.f32.mxu0 %vm107_vm0, %v99_v15  ;;  %p2226_p12 = scmp.ne.s32.totalorder %s1615_s6, %s2225_s18  ;;  %p2231_p0 = scmp.lt.s32.totalorder %s2225_s18, %s2225_s18 }
  0x63   :  { %1783 = vmatprep.mubr.msk.f32.mxu1 %vm107_vm0, %v99_v15  ;;  %1979 = vmatprep.subr.bf16.mxu0 %v2262_v13 }
  0x64   :  { %1768 = vmatmul.mubr.msk.f32.gmra.mrb[2].mxu0 %vm107_vm0, %v100_v20  ;;  %1985 = vmatprep.subr.bf16.mxu1 %v2262_v13  ;;  %p2232_p1 = por %p2231_p0, %p2230_p13 }
  0x65   :  { %1784 = vmatmul.mubr.msk.f32.gmra.mrb[2].mxu1 %vm107_vm0, %v100_v20  ;;  %1770 = vmatprep.mubr.msk.f32.mxu0 %vm107_vm0, %v101_v21 }
  0x66   :  { %1786 = vmatprep.mubr.msk.f32.mxu1 %vm107_vm0, %v101_v21  ;;  %1981 = vmatpush3.bf16.msra.mxu0 %v2408_v22  ;;  %p2233_p2 = pnand %p2232_p1, %p2226_p12 }
  0x67   :  { %1987 = vmatpush3.bf16.msra.mxu1 %v2412_v23  ;;  %1988 = vmatprep.subr.bf16.mxu0 %v2262_v13 }
  0x68   :  { %1771 = vmatmul.mubr.msk.f32.gmra.mrb[4].mxu0 %vm107_vm0, %v102_v24  ;;  %1994 = vmatprep.subr.bf16.mxu1 %v2262_v13 }
  0x69   :  { %1787 = vmatmul.mubr.msk.f32.gmra.mrb[4].mxu1 %vm107_vm0, %v102_v24  ;;  %1773 = vmatprep.mubr.msk.f32.mxu0 %vm107_vm0, %v103_v25 }
  0x6a   :  { %1789 = vmatprep.mubr.msk.f32.mxu1 %vm107_vm0, %v103_v25 }
  0x6c   :  { %1774 = vmatmul.mubr.msk.f32.gmra.mrb[6].mxu0 %vm107_vm0, %v104_v26 }
  0x6d   :  { %1790 = vmatmul.mubr.msk.f32.gmra.mrb[6].mxu1 %vm107_vm0, %v104_v26  ;;  %1800 = vmatprep.mubr.msk.f32.mxu0 %vm2263_vm1, %v2264_v27 }
  0x6e   :  { %1811 = vmatprep.mubr.msk.f32.mxu1 %vm2263_vm1, %v2264_v27 }
  0x70   :  { %1801 = vmatmul.mubr.f32.vlgmr.msra.gmra.mrb[8].mxu0 %v2264_v27 }
  0x71   :  { %1812 = vmatmul.mubr.f32.vlgmr.msra.gmra.mrb[8].mxu1 %v2264_v27  ;;  %1990 = vmatpush3.bf16.msra.mxu0 %v2397_v12 }
  0x72   :  { %1996 = vmatpush3.bf16.msra.mxu1 %v2400_v14  ;;  %1991 = vmatprep.subr.bf16.mxu0 %v2262_v13 }
  0x73   :  { %1997 = vmatprep.subr.bf16.mxu1 %v2262_v13  ;;  %1822 = vmatprep.mubr.msk.f32.mxu0 %vm2263_vm1, %v2264_v27 }
  0x74   :  { %1833 = vmatprep.mubr.msk.f32.mxu1 %vm2263_vm1, %v2264_v27 }
  0x75   :  { %1993 = vmatpush3.bf16.msra.mxu0 %v2408_v22 }
  0x76   :  { %1999 = vmatpush3.bf16.msra.mxu1 %v2412_v23  ;;  %2000 = vmatprep.subr.bf16.mxu0 %v2262_v13 }
  0x77   :  { %2006 = vmatprep.subr.bf16.mxu1 %v2262_v13 }
 0x133   :  { %v1766_v30 = vpop.f32.mrb[0].mxu0 }
 0x134   :  { %v244_v31 = vadd.f32 %v1766_v30, %v1636_v28  ;;  %v1782_v32 = vpop.f32.mrb[0].mxu1  ;;  %v198_v33 = vpop.f32.mrb[1].mxu0 }
 0x135   :  { %v2453_v34 = vadd.f32 %v1782_v32, %v1645_v29  ;;  %v319_v35 = vpop.f32.mrb[1].mxu1  ;;  %v243_v59 = vadd.f32 %v1636_v28, %v198_v33 }
 0x136   :  { %v2455_v36 = vadd.f32 %v1645_v29, %v319_v35 }
 0x137   :  { %v1769_v37 = vpop.f32.mrb[2].mxu0 }
 0x138   :  { %v2457_v38 = vadd.f32 %v1769_v37, %v1636_v28  ;;  %v1785_v39 = vpop.f32.mrb[2].mxu1  ;;  %v208_v40 = vpop.f32.mrb[3].mxu0 }
 0x139   :  { %v2459_v41 = vadd.f32 %v1785_v39, %v1645_v29  ;;  %v2461_v42 = vadd.f32 %v1636_v28, %v208_v40  ;;  %v329_v43 = vpop.f32.mrb[3].mxu1 }
 0x13a   :  { %v2463_v44 = vadd.f32 %v1645_v29, %v329_v43 }
 0x13b   :  { %v1772_v45 = vpop.f32.mrb[4].mxu0 }
 0x13c   :  { %v2465_v46 = vadd.f32 %v1772_v45, %v1636_v28  ;;  %v1788_v47 = vpop.f32.mrb[4].mxu1  ;;  %v218_v48 = vpop.f32.mrb[5].mxu0 }
 0x13d   :  { %v2467_v49 = vadd.f32 %v1788_v47, %v1645_v29  ;;  %v2469_v50 = vadd.f32 %v1636_v28, %v218_v48  ;;  %v339_v51 = vpop.f32.mrb[5].mxu1 }
 0x13e   :  { %v2471_v52 = vadd.f32 %v1645_v29, %v339_v51 }
 0x13f   :  { %v1775_v53 = vpop.f32.mrb[6].mxu0 }
 0x140   :  { %v2473_v54 = vadd.f32 %v1775_v53, %v1636_v28  ;;  %v1791_v55 = vpop.f32.mrb[6].mxu1  ;;  %v228_v56 = vpop.f32.mrb[7].mxu0 }
 0x141   :  { %v2475_v57 = vadd.f32 %v1636_v28, %v228_v56  ;;  %v349_v58 = vpop.f32.mrb[7].mxu1  ;;  %v371_v61 = vadd.f32 %v1791_v55, %v1645_v29 }
 0x142   :  { %v370_v60 = vadd.f32 %v1645_v29, %v349_v58 }
 0x143   :  { %v450_v62 = vpop.f32.mrb[8].mxu0 }
 0x144   :  { %v454_v63 = vadd.f32 %v450_v62, %v243_v59  ;;  %v522_v0 = vpop.f32.mrb[8].mxu1  ;;  %v1802_v1 = vpop.f32.mrb[9].mxu0 }
 0x145   :  { %v526_v2 = vadd.f32 %v522_v0, %v371_v61  ;;  %v1813_v3 = vpop.f32.mrb[9].mxu1 }
 0x146   :  { %2083 = vtanh.f32 %v454_v63 }
 0x147   :  { %2085 = vtanh.f32 %v526_v2 }
 0x150   :  { %v2084_v4 = vpop.eup %2083 }
 0x151   :  { %v2086_v5 = vpop.eup %2085  ;;  %528 = vst.msk [vmem:[#allocation11] sm:$0xff] %vm380_vm2, %v2084_v4  ;;  %1823 = vmatmul.mubr.msk.f32.vlgmr.msra.gmra.mrb[10].mxu0 %vm380_vm2, %v2084_v4 }
 0x152   :  { %530 = vst.msk [vmem:[#allocation11 + $0x78] sm:$0xff] %vm380_vm2, %v2086_v5  ;;  %1834 = vmatmul.mubr.msk.f32.vlgmr.msra.gmra.mrb[10].mxu1 %vm380_vm2, %v2086_v5  ;;  %2002 = vmatpush3.bf16.msra.mxu0 %v2397_v12 }
 0x153   :  { %2008 = vmatpush3.bf16.msra.mxu1 %v2400_v14  ;;  %2003 = vmatprep.subr.bf16.mxu0 %v2262_v13 }
 0x154   :  { %2009 = vmatprep.subr.bf16.mxu1 %v2262_v13  ;;  %1844 = vmatprep.mubr.msk.f32.mxu0 %vm2263_vm1, %v2264_v27 }
 0x155   :  { %1855 = vmatprep.mubr.msk.f32.mxu1 %vm2263_vm1, %v2264_v27 }
 0x156   :  { %2005 = vmatpush3.bf16.msra.mxu0 %v2408_v22 }
 0x157   :  { %2011 = vmatpush3.bf16.msra.mxu1 %v2412_v23  ;;  %2012 = vmatprep.subr.bf16.mxu0 %v2262_v13 }
 0x158   :  { %2018 = vmatprep.subr.bf16.mxu1 %v2262_v13 }
 0x224   :  { %v600_v6 = vpop.f32.mrb[10].mxu0 }
 0x225   :  { %v604_v7 = vadd.f32 %v600_v6, %v244_v31  ;;  %v675_v8 = vpop.f32.mrb[10].mxu1  ;;  %v1824_v9 = vpop.f32.mrb[11].mxu0 }
 0x226   :  { %v679_v10 = vadd.f32 %v675_v8, %v370_v60  ;;  %v1835_v11 = vpop.f32.mrb[11].mxu1 }
 0x227   :  { %2087 = vtanh.f32 %v604_v7 }
 0x228   :  { %2089 = vtanh.f32 %v679_v10 }
 0x231   :  { %v2088_v15 = vpop.eup %2087 }
 0x232   :  { %v2090_v16 = vpop.eup %2089  ;;  %682 = vst.msk [vmem:[#allocation11 + $0x8] sm:$0xff] %vm380_vm2, %v2088_v15  ;;  %1845 = vmatmul.mubr.msk.f32.vlgmr.msra.gmra.mrb[12].mxu0 %vm380_vm2, %v2088_v15 }
 0x233   :  { %684 = vst.msk [vmem:[#allocation11 + $0x70] sm:$0xff] %vm380_vm2, %v2090_v16  ;;  %1856 = vmatmul.mubr.msk.f32.vlgmr.msra.gmra.mrb[12].mxu1 %vm380_vm2, %v2090_v16  ;;  %2014 = vmatpush3.bf16.msra.mxu0 %v2397_v12 }
 0x234   :  { %2020 = vmatpush3.bf16.msra.mxu1 %v2400_v14  ;;  %2015 = vmatprep.subr.bf16.mxu0 %v2262_v13 }
 0x235   :  { %2021 = vmatprep.subr.bf16.mxu1 %v2262_v13  ;;  %1866 = vmatprep.mubr.msk.f32.mxu0 %vm2263_vm1, %v2264_v27 }
 0x236   :  { %1877 = vmatprep.mubr.msk.f32.mxu1 %vm2263_vm1, %v2264_v27 }
 0x237   :  { %2017 = vmatpush3.bf16.msra.mxu0 %v2408_v22 }
 0x238   :  { %2023 = vmatpush3.bf16.msra.mxu1 %v2412_v23  ;;  %2024 = vmatprep.subr.bf16.mxu0 %v2262_v13 }
 0x239   :  { %2030 = vmatprep.subr.bf16.mxu1 %v2262_v13 }
 0x305   :  { %v754_v17 = vpop.f32.mrb[12].mxu0 }
 0x306   :  { %v758_v18 = vadd.f32 %v754_v17, %v2461_v42  ;;  %v829_v19 = vpop.f32.mrb[12].mxu1  ;;  %v1846_v20 = vpop.f32.mrb[13].mxu0 }
 0x307   :  { %v833_v21 = vadd.f32 %v829_v19, %v2467_v49  ;;  %v1857_v24 = vpop.f32.mrb[13].mxu1 }
 0x308   :  { %2091 = vtanh.f32 %v758_v18 }
 0x309   :  { %2093 = vtanh.f32 %v833_v21 }
 0x312   :  { %v2092_v25 = vpop.eup %2091 }
 0x313   :  { %v2094_v26 = vpop.eup %2093  ;;  %836 = vst.msk [vmem:[#allocation11 + $0x10] sm:$0xff] %vm380_vm2, %v2092_v25  ;;  %1867 = vmatmul.mubr.msk.f32.vlgmr.msra.gmra.mrb[14].mxu0 %vm380_vm2, %v2092_v25 }
 0x314   :  { %838 = vst.msk [vmem:[#allocation11 + $0x68] sm:$0xff] %vm380_vm2, %v2094_v26  ;;  %1878 = vmatmul.mubr.msk.f32.vlgmr.msra.gmra.mrb[14].mxu1 %vm380_vm2, %v2094_v26  ;;  %2026 = vmatpush3.bf16.msra.mxu0 %v2397_v12 }
 0x315   :  { %2032 = vmatpush3.bf16.msra.mxu1 %v2400_v14  ;;  %2027 = vmatprep.subr.bf16.mxu0 %v2262_v13 }
 0x316   :  { %2033 = vmatprep.subr.bf16.mxu1 %v2262_v13  ;;  %1888 = vmatprep.mubr.msk.f32.mxu0 %vm2263_vm1, %v2264_v27 }
 0x317   :  { %1899 = vmatprep.mubr.msk.f32.mxu1 %vm2263_vm1, %v2264_v27 }
 0x318   :  { %2029 = vmatpush3.bf16.msra.mxu0 %v2408_v22 }
 0x319   :  { %2035 = vmatpush3.bf16.msra.mxu1 %v2412_v23  ;;  %2036 = vmatprep.subr.bf16.mxu0 %v2262_v13 }
 0x31a   :  { %2042 = vmatprep.subr.bf16.mxu1 %v2262_v13 }
 0x3e6   :  { %v908_v28 = vpop.f32.mrb[14].mxu0 }
 0x3e7   :  { %v912_v29 = vadd.f32 %v908_v28, %v2457_v38  ;;  %v983_v30 = vpop.f32.mrb[14].mxu1  ;;  %v1868_v31 = vpop.f32.mrb[15].mxu0 }
 0x3e8   :  { %v987_v32 = vadd.f32 %v983_v30, %v2471_v52  ;;  %v1879_v33 = vpop.f32.mrb[15].mxu1 }
 0x3e9   :  { %2095 = vtanh.f32 %v912_v29 }
 0x3ea   :  { %2097 = vtanh.f32 %v987_v32 }
 0x3f3   :  { %v2096_v35 = vpop.eup %2095 }
 0x3f4   :  { %v2098_v37 = vpop.eup %2097  ;;  %990 = vst.msk [vmem:[#allocation11 + $0x18] sm:$0xff] %vm380_vm2, %v2096_v35  ;;  %1889 = vmatmul.mubr.msk.f32.vlgmr.msra.gmra.mrb[16].mxu0 %vm380_vm2, %v2096_v35 }
 0x3f5   :  { %992 = vst.msk [vmem:[#allocation11 + $0x60] sm:$0xff] %vm380_vm2, %v2098_v37  ;;  %1900 = vmatmul.mubr.msk.f32.vlgmr.msra.gmra.mrb[16].mxu1 %vm380_vm2, %v2098_v37  ;;  %2038 = vmatpush3.bf16.msra.mxu0 %v2397_v12 }
 0x3f6   :  { %2044 = vmatpush3.bf16.msra.mxu1 %v2400_v14  ;;  %2039 = vmatprep.subr.bf16.mxu0 %v2262_v13 }
 0x3f7   :  { %2045 = vmatprep.subr.bf16.mxu1 %v2262_v13  ;;  %1910 = vmatprep.mubr.msk.f32.mxu0 %vm2263_vm1, %v2264_v27 }
 0x3f8   :  { %1921 = vmatprep.mubr.msk.f32.mxu1 %vm2263_vm1, %v2264_v27 }
 0x3f9   :  { %2041 = vmatpush3.bf16.msra.mxu0 %v2408_v22 }
 0x3fa   :  { %2047 = vmatpush3.bf16.msra.mxu1 %v2412_v23  ;;  %2048 = vmatprep.subr.bf16.mxu0 %v2262_v13 }
 0x3fb   :  { %2054 = vmatprep.subr.bf16.mxu1 %v2262_v13 }
 0x4c7   :  { %v1062_v38 = vpop.f32.mrb[16].mxu0 }
 0x4c8   :  { %v1066_v39 = vadd.f32 %v1062_v38, %v2469_v50  ;;  %v1137_v40 = vpop.f32.mrb[16].mxu1  ;;  %v1890_v42 = vpop.f32.mrb[17].mxu0 }
 0x4c9   :  { %v1141_v43 = vadd.f32 %v1137_v40, %v2459_v41  ;;  %v1901_v45 = vpop.f32.mrb[17].mxu1 }
 0x4ca   :  { %2099 = vtanh.f32 %v1066_v39 }
 0x4cb   :  { %2101 = vtanh.f32 %v1141_v43 }
 0x4d4   :  { %v2100_v47 = vpop.eup %2099 }
 0x4d5   :  { %v2102_v48 = vpop.eup %2101  ;;  %1144 = vst.msk [vmem:[#allocation11 + $0x20] sm:$0xff] %vm380_vm2, %v2100_v47  ;;  %1911 = vmatmul.mubr.msk.f32.vlgmr.msra.gmra.mrb[18].mxu0 %vm380_vm2, %v2100_v47 }
 0x4d6   :  { %1146 = vst.msk [vmem:[#allocation11 + $0x58] sm:$0xff] %vm380_vm2, %v2102_v48  ;;  %1922 = vmatmul.mubr.msk.f32.vlgmr.msra.gmra.mrb[18].mxu1 %vm380_vm2, %v2102_v48  ;;  %2050 = vmatpush3.bf16.msra.mxu0 %v2397_v12 }
 0x4d7   :  { %2056 = vmatpush3.bf16.msra.mxu1 %v2400_v14  ;;  %2051 = vmatprep.subr.bf16.mxu0 %v2262_v13 }
 0x4d8   :  { %2057 = vmatprep.subr.bf16.mxu1 %v2262_v13  ;;  %1932 = vmatprep.mubr.msk.f32.mxu0 %vm2263_vm1, %v2264_v27 }
 0x4d9   :  { %1943 = vmatprep.mubr.msk.f32.mxu1 %vm2263_vm1, %v2264_v27 }
 0x4da   :  { %2053 = vmatpush3.bf16.msra.mxu0 %v2408_v22 }
 0x4db   :  { %2059 = vmatpush3.bf16.msra.mxu1 %v2412_v23  ;;  %2060 = vmatprep.subr.bf16.mxu0 %v2262_v13 }
 0x4dc   :  { %2066 = vmatprep.subr.bf16.mxu1 %v2262_v13 }
 0x5a8   :  { %v1216_v41 = vpop.f32.mrb[18].mxu0 }
 0x5a9   :  { %v1220_v49 = vadd.f32 %v1216_v41, %v2465_v46  ;;  %v1291_v50 = vpop.f32.mrb[18].mxu1  ;;  %v1912_v51 = vpop.f32.mrb[19].mxu0 }
 0x5aa   :  { %v1295_v52 = vadd.f32 %v1291_v50, %v2463_v44  ;;  %v1923_v53 = vpop.f32.mrb[19].mxu1 }
 0x5ab   :  { %2103 = vtanh.f32 %v1220_v49 }
 0x5ac   :  { %2105 = vtanh.f32 %v1295_v52 }
 0x5b5   :  { %v2104_v55 = vpop.eup %2103 }
 0x5b6   :  { %v2106_v56 = vpop.eup %2105  ;;  %1298 = vst.msk [vmem:[#allocation11 + $0x28] sm:$0xff] %vm380_vm2, %v2104_v55  ;;  %1933 = vmatmul.mubr.msk.f32.vlgmr.msra.gmra.mrb[20].mxu0 %vm380_vm2, %v2104_v55 }
 0x5b7   :  { %1300 = vst.msk [vmem:[#allocation11 + $0x50] sm:$0xff] %vm380_vm2, %v2106_v56  ;;  %1944 = vmatmul.mubr.msk.f32.vlgmr.msra.gmra.mrb[20].mxu1 %vm380_vm2, %v2106_v56  ;;  %2062 = vmatpush3.bf16.msra.mxu0 %v2397_v12 }
 0x5b8   :  { %2068 = vmatpush3.bf16.msra.mxu1 %v2400_v14  ;;  %2063 = vmatprep.subr.bf16.mxu0 %v2262_v13 }
 0x5b9   :  { %2069 = vmatprep.subr.bf16.mxu1 %v2262_v13  ;;  %1954 = vmatprep.mubr.msk.f32.mxu0 %vm2263_vm1, %v2264_v27 }
 0x5ba   :  { %1965 = vmatprep.mubr.msk.f32.mxu1 %vm2263_vm1, %v2264_v27 }
 0x5bb   :  { %2065 = vmatpush3.bf16.msra.mxu0 %v2408_v22 }
 0x5bc   :  { %2071 = vmatpush3.bf16.msra.mxu1 %v2412_v23 }
 0x689   :  { %v1370_v44 = vpop.f32.mrb[20].mxu0 }
 0x68a   :  { %v1374_v46 = vadd.f32 %v1370_v44, %v2475_v57  ;;  %v1445_v12 = vpop.f32.mrb[20].mxu1  ;;  %v1934_v58 = vpop.f32.mrb[21].mxu0 }
 0x68b   :  { %v1449_v14 = vadd.f32 %v1445_v12, %v2453_v34  ;;  %v1945_v59 = vpop.f32.mrb[21].mxu1 }
 0x68c   :  { %2107 = vtanh.f32 %v1374_v46 }
 0x68d   :  { %2109 = vtanh.f32 %v1449_v14 }
 0x696   :  { %v2108_v13 = vpop.eup %2107 }
 0x697   :  { %v2110_v60 = vpop.eup %2109  ;;  %1452 = vst.msk [vmem:[#allocation11 + $0x30] sm:$0xff] %vm380_vm2, %v2108_v13  ;;  %1955 = vmatmul.mubr.msk.f32.vlgmr.msra.gmra.mrb[22].mxu0 %vm380_vm2, %v2108_v13 }
 0x698   :  { %1454 = vst.msk [vmem:[#allocation11 + $0x48] sm:$0xff] %vm380_vm2, %v2110_v60  ;;  %1966 = vmatmul.mubr.msk.f32.vlgmr.msra.gmra.mrb[22].mxu1 %vm380_vm2, %v2110_v60 }
 0x76a   :  { %v1524_v22 = vpop.f32.mrb[22].mxu0 }
 0x76b   :  { %v1528_v23 = vadd.f32 %v1524_v22, %v2473_v54  ;;  %v1599_v27 = vpop.f32.mrb[22].mxu1  ;;  %v1956_v57 = vpop.f32.mrb[23].mxu0 }
 0x76c   :  { %v1603_v34 = vadd.f32 %v1599_v27, %v2455_v36  ;;  %v1967_v61 = vpop.f32.mrb[23].mxu1 }
 0x76d   :  { %2111 = vtanh.f32 %v1528_v23 }
 0x76e   :  { %2113 = vtanh.f32 %v1603_v34 }
 0x777   :  { %v2112_v62 = vpop.eup %2111 }
 0x778   :  { %v2114_v63 = vpop.eup %2113  ;;  %1606 = vst.msk [vmem:[#allocation11 + $0x38] sm:$0xff] %vm380_vm2, %v2112_v62 }
 0x779   :  { %1608 = vst.msk [vmem:[#allocation11 + $0x40] sm:$0xff] %vm380_vm2, %v2114_v63 }
 0x77a   :  { %2236 = shalt.err (!%p2233_p2)
}
 0x77b   :  { %s2237_s21 = scalar_lea.hbm %s2611_s7, 2048 }
 0x77c   :  { %p2238_p3 = scmp.ne.s32.totalorder %s2611_s7, %s2237_s21  ;;  %p2241_p4 = scmp.lt.u32.totalorder %s2237_s21, %s2611_s7 }
 0x77e   :  { %p2243_p5 = pnand %p2241_p4, %p2238_p3 }
 0x780   :  { %2246 = shalt.err (!%p2243_p5)
}
 0x781   :  { %1620 = dma.vmem_to_hbm [thread:$0]  %s1615_s6, 2048, %s2611_s7, [#allocation4], %s2257_s13, %s2257_s13, %s2258_s14  }
 0x782   :  { %2253 = dma.done.wait [#allocation4], 2048  }
 0x783   :  { %2254 = vsyncadd [#allocation4], 4294965248 }
 0x784   :  { %1624 = vsyncpa [#allocation3], 1 }
 0x785   :  { %1625 = vsyncpa [#allocation6], 1 }
 0x786   :  { %1626 = vsyncpa [#allocation9], 1 }
 0x787   :  { %1627 = vsyncpa [#allocation4], 1 }

</bundles_post_ra>
